<compile_context>
chip_gen: v7x
topology: tpu7x:2x2x1
jax: 0.10.0
libtpu: 0.0.40
codegen_flags: <defaults>
</compile_context>

<pallas_src>
import functools

import jax
import jax.numpy as jnp
from jax.experimental import pallas as pl
from jax.experimental.pallas import tpu as pltpu

_MIB = 1024 * 1024
_LANE = 128
_MAX_LANE_WIDTH = 2048


@functools.lru_cache(maxsize=1)
def _device_kind() -> str:
    try:
        return jax.devices()[0].device_kind.lower()
    except Exception:  # pragma: no cover - CPU/interpret fallbacks
        return ""


def _is_v7x() -> bool:
    return "7" in _device_kind()


def _target_block_bytes() -> int:
    # v5e: 16 MiB scoped-VMEM default -> 2 MiB tiles (2 bufs x (in+out) = 8 MiB).
    # v6e/v7x: 32 MiB scoped default -> 4 MiB tiles amortize per-step overhead.
    kind = _device_kind()
    if _is_v7x() or "v6" in kind or "6e" in kind:
        return 4 * _MIB
    return 2 * _MIB


def _clipped_relu_kernel(params_ref, x_ref, o_ref, *, dequantize):
    # params_ref (SMEM, f32[3]) = [alpha, scale, inv_scale]; scalars precomputed
    # in the wrapper so there is no per-element divide.
    alpha = params_ref[0]
    scale = params_ref[1]
    inv_scale = params_ref[2]

    x = x_ref[...].astype(jnp.float32)
    y = jnp.maximum(x, 0.0)                       # F.relu
    y = jnp.where(y < alpha, y, alpha)            # torch.where(x < alpha, x, alpha)
    q = jnp.round(y * scale)                      # linear_quantize (zero_point == 0)
    out = q * inv_scale if dequantize else q      # linear_dequantize
    # NOTE: for dequantize=False and num_bits <= 8 the codes could be emitted as
    # int8 to shrink the write stream ~4x, but that changes the module's output
    # dtype, so it is intentionally not done here.
    o_ref[...] = out.astype(o_ref.dtype)


def _aligned_2d_view(total):
    """total % 128 == 0 -> (rows, cols): widest 128-multiple divisor as lanes."""
    for cand in range(_MAX_LANE_WIDTH, _LANE - 1, -_LANE):
        if total % cand == 0 and total // cand >= 8:
            return total // cand, cand
    for cand in range(_MAX_LANE_WIDTH, _LANE - 1, -_LANE):
        if total % cand == 0:
            return total // cand, cand
    return total // _LANE, _LANE  # unreachable when total % 128 == 0


def _unaligned_2d_view(shape, itemsize, target_bytes):
    """Unpadded 2-D view (rows, cols) with cols = a full trailing-dims product.

    Keeps the last block dim equal to the full array extent (legal without the
    128-divisibility), so no pad/slice copies are needed; returns None only in
    the pathological case where a single trailing row exceeds the tile budget.
    """
    col_budget = max(_LANE, target_bytes // (8 * itemsize))  # leave >=8 sublane rows
    cols, k = shape[-1], 1
    for j in range(2, len(shape) + 1):
        suffix = 1
        for d in shape[-j:]:
            suffix *= d
        if suffix <= col_budget:
            cols, k = suffix, j
        else:
            break
    if cols > col_budget:
        return None
    rows = 1
    for d in shape[: len(shape) - k]:
        rows *= d
    return rows, cols


def _pick_block_rows(rows, cols, itemsize, target_bytes):
    if rows * cols * itemsize <= target_bytes:
        return rows                                   # single block (full extent)
    block_rows = max(8, (target_bytes // (cols * itemsize)) // 8 * 8)
    return min(block_rows, rows)


def clipped_relu(x, alpha, *, num_bits, dequantize=True, block_bytes=None):
    """Pallas implementation of ClippedReLU.forward. x: any shape (NCHW here)."""
    orig_shape = x.shape
    orig_dtype = x.dtype
    total = int(x.size)
    itemsize = jnp.dtype(orig_dtype).itemsize
    target_bytes = block_bytes if block_bytes is not None else _target_block_bytes()

    pad = 0
    if total % _LANE == 0:
        rows, cols = _aligned_2d_view(total)
        x2d = x.reshape(rows, cols)
    else:
        view = _unaligned_2d_view(orig_shape, itemsize, target_bytes)
        if view is not None:
            rows, cols = view
            x2d = x.reshape(rows, cols)
        else:
            # Pathological fallback: unaligned total AND a trailing dim larger
            # than the tile budget. Costs one extra HBM round trip; essentially
            # never hit for conv activations.
            cols = _LANE
            padded = pl.cdiv(total, cols) * cols
            pad = padded - total
            rows = padded // cols
            x2d = jnp.pad(x.reshape(-1), (0, pad)).reshape(rows, cols)

    block_rows = _pick_block_rows(rows, cols, itemsize, target_bytes)
    grid = (pl.cdiv(rows, block_rows),)

    # Hoisted quantization scalars: [alpha, scale, inv_scale] in SMEM.
    # inv_scale computed directly as alpha / (2**b - 1) for fidelity.
    alpha_f = jnp.asarray(alpha, jnp.float32).reshape(())
    n_levels = jnp.float32(2 ** num_bits - 1)
    scale = n_levels / alpha_f
    inv_scale = alpha_f / n_levels
    params = jnp.stack([alpha_f, scale, inv_scale]).astype(jnp.float32)

    is_v7x = _is_v7x()
    if is_v7x and grid[0] >= 2:
        # Actually shard the row grid across both TensorCores on v7x; plain
        # "parallel" semantics do not change codegen.
        dim_sems = (pltpu.CORE_PARALLEL,)
    else:
        dim_sems = ("arbitrary",)

    x_spec_kwargs = {}
    if is_v7x:
        # Deeper input buffering keeps the DMA queue full at 3.2+ TB/s.
        x_spec_kwargs["pipeline_mode"] = pl.Buffered(3)

    kernel = functools.partial(_clipped_relu_kernel, dequantize=dequantize)

    out2d = pl.pallas_call(
        kernel,
        out_shape=jax.ShapeDtypeStruct((rows, cols), orig_dtype),
        grid=grid,                                   # partial last block is masked
        in_specs=[
            pl.BlockSpec(memory_space=pltpu.SMEM),                      # scalars
            pl.BlockSpec((block_rows, cols), lambda i: (i, 0), **x_spec_kwargs),
        ],
        out_specs=pl.BlockSpec((block_rows, cols), lambda i: (i, 0)),
        compiler_params=pltpu.CompilerParams(dimension_semantics=dim_sems),
    )(params, x2d)

    if pad:
        return out2d.reshape(-1)[:total].reshape(orig_shape)
    return out2d.reshape(orig_shape)


if __name__ == "__main__":
    # Deterministic "parameter" init, matching the module's __init__ default.
    num_bits = 4
    alpha = 8.0                      # nn.Parameter(torch.Tensor([8.0]))

    def ref_fn(xx, a, nb, deq):
        s = (2.0 ** nb - 1.0) / a
        y = jnp.maximum(xx, 0.0)
        y = jnp.where(y < a, y, a)
        q = jnp.round(y * s)
        return q / s if deq else q

    key = jax.random.PRNGKey(0)
    k0, k1, k2 = jax.random.split(key, 3)

    # 1) Typical aligned NCHW activation (dequantize=True).
    x = jax.random.normal(k0, (2, 4, 16, 16), dtype=jnp.float32) * 4.0
    out = jax.block_until_ready(
        clipped_relu(x, alpha, num_bits=num_bits, dequantize=True))
    ref = ref_fn(x, jnp.float32(alpha), num_bits, True)
    assert out.shape == x.shape and out.dtype == x.dtype
    assert jnp.allclose(out, ref, atol=1e-5), "mismatch vs reference"

    # 2) Unaligned (total % 128 != 0) shape, quantize-only path: exercises the
    #    no-pad trailing-full-extent layout.
    x_odd = jax.random.normal(k1, (3, 5, 7, 9), jnp.float32) * 4.0
    out_odd = jax.block_until_ready(
        clipped_relu(x_odd, alpha, num_bits=num_bits, dequantize=False))
    ref_odd = ref_fn(x_odd, jnp.float32(alpha), num_bits, False)
    assert jnp.allclose(out_odd, ref_odd, atol=1e-5), "mismatch (odd shape)"

    # 3) Multi-step grid with a masked partial last block (small tile override
    #    so the grid has >1 step at a small shape).
    x_big = jax.random.normal(k2, (8, 8, 20, 16), jnp.float32) * 4.0
    out_big = jax.block_until_ready(
        clipped_relu(x_big, alpha, num_bits=num_bits, dequantize=True,
                     block_bytes=32 * 1024))
    ref_big = ref_fn(x_big, jnp.float32(alpha), num_bits, True)
    assert jnp.allclose(out_big, ref_big, atol=1e-5), "mismatch (multi-block)"

    # TODO(synk): STEQuantizer's straight-through backward (autograd) is out of
    # scope here; only the forward pass is implemented (wrap with jax.custom_vjp
    # if this feeds training).
    print("KERNEL_OK")
</pallas_src>

<mosaic_0001>
module attributes {stable_mosaic.version = 11 : i64} {
  func.func @_clipped_relu_kernel(%arg0: i32, %arg1: memref<3xf32, #tpu.memory_space<smem>>, %arg2: memref<8x256xf32, #tpu.memory_space<vmem>>, %arg3: memref<8x256xf32, #tpu.memory_space<vmem>>) attributes {dimension_semantics = [#tpu.dimension_semantics<arbitrary>], iteration_bounds = array<i64: 1>, scalar_prefetch = 0 : i64, scratch_operands = 0 : i64, tpu.core_type = #tpu.core_type<tc>, window_params = [{transform_indices = @transform_0, window_bounds = array<i64: 3>}, {transform_indices = @transform_1, window_bounds = array<i64: 8, 256>}, {transform_indices = @transform_2, window_bounds = array<i64: 8, 256>}]} {
    %c0 = arith.constant 0 : index
    %0 = memref.load %arg1[%c0] : memref<3xf32, #tpu.memory_space<smem>>
    %c1 = arith.constant 1 : index
    %1 = memref.load %arg1[%c1] : memref<3xf32, #tpu.memory_space<smem>>
    %c2 = arith.constant 2 : index
    %2 = memref.load %arg1[%c2] : memref<3xf32, #tpu.memory_space<smem>>
    %c0_0 = arith.constant 0 : index
    %c0_1 = arith.constant 0 : index
    %3 = vector.load %arg2[%c0_0, %c0_1] : memref<8x256xf32, #tpu.memory_space<vmem>>, vector<8x256xf32>
    %cst = arith.constant 0.000000e+00 : f32
    %4 = vector.broadcast %cst : f32 to vector<8x256xf32>
    %5 = arith.maximumf %3, %4 : vector<8x256xf32>
    %6 = vector.broadcast %0 : f32 to vector<8x256xf32>
    %7 = arith.cmpf olt, %5, %6 : vector<8x256xf32>
    %8 = vector.broadcast %0 : f32 to vector<8x256xf32>
    %9 = arith.select %7, %5, %8 : vector<8x256xi1>, vector<8x256xf32>
    %10 = vector.broadcast %1 : f32 to vector<8x256xf32>
    %11 = arith.mulf %9, %10 : vector<8x256xf32>
    %12 = math.roundeven %11 : vector<8x256xf32>
    %13 = vector.broadcast %2 : f32 to vector<8x256xf32>
    %14 = arith.mulf %12, %13 : vector<8x256xf32>
    %c0_2 = arith.constant 0 : index
    %c0_3 = arith.constant 0 : index
    %15 = vector.load %arg3[%c0_2, %c0_3] : memref<8x256xf32, #tpu.memory_space<vmem>>, vector<8x256xf32>
    tpu.vector_store %arg3[%c0_2, %c0_3], %14 {strides = array<i32>} : memref<8x256xf32, #tpu.memory_space<vmem>>, vector<8x256xf32>,
    return
  }
  func.func @transform_0(%arg0: i32) -> i32 {
    %c0_i32 = arith.constant 0 : i32
    %c0_i32_0 = arith.constant 0 : i32
    return %c0_i32 : i32
  }
  func.func @transform_1(%arg0: i32) -> (i32, i32) {
    %c0_i32 = arith.constant 0 : i32
    %c0_i32_0 = arith.constant 0 : i32
    return %arg0, %c0_i32 : i32, i32
  }
  func.func @transform_2(%arg0: i32) -> (i32, i32) {
    %c0_i32 = arith.constant 0 : i32
    %c0_i32_0 = arith.constant 0 : i32
    return %arg0, %c0_i32 : i32, i32
  }
}

</mosaic_0001>

<bundles_post_ra>
// kernel: tpu_custom_call.1
= control target key start
LH: loop header
LB: loop body
LE: loop exit
PB: predicated region body
PF: predicated region fallthrough
CT: control target
= control target key end

     0   :  { %7 = vsyncpa [#allocation5], 0  ;;  %s194_s0 = inlined_call_operand.hbm [shape: f32[3], index: 0, kind: input, shape index: {}]   ;;  %s195_s1 = inlined_call_operand.hbm [shape: f32[8,256], index: 1, kind: input, shape index: {}]   ;;  %s196_s2 = inlined_call_operand.hbm [shape: f32[8,256], index: 2, kind: output, shape index: {}]  }
   0x1   :  { %8 = vsyncpa [#allocation3], 0 }
   0x2   :  { %9 = vsyncpa [#allocation4], 0  ;;  %s80_s11 = scalar_lea.hbm %s194_s0, 16 }
   0x3   :  { %p81_p0 = scmp.ne.s32.totalorder %s194_s0, %s80_s11  ;;  %p84_p1 = scmp.lt.u32.totalorder %s80_s11, %s194_s0 }
   0x5   :  { %p86_p2 = pnand %p84_p1, %p81_p0 }
   0x7   :  { %89 = shalt.err (!%p86_p2)
}
   0x8   :  { %s140_s16 = smov [#allocation2]   ;;  %s141_s19 = smov [#allocation6]  }
   0x9   :  { %17 = dma.hbm_to_smem %s194_s0, 16, %s140_s16, [#allocation5]  }
   0xa   :  { %s24_s20 = sshll.u32 %s141_s19, 4  ;;  %s90_s23 = scalar_lea.hbm %s195_s1, 256  ;;  %s25_s20 = int_to_ptr.vmem [resolvable:$true] %s24_s20 }
   0xb   :  { %p91_p3 = scmp.ne.s32.totalorder %s195_s1, %s90_s23  ;;  %p94_p4 = scmp.lt.u32.totalorder %s90_s23, %s195_s1 }
   0xd   :  { %p96_p5 = pnand %p94_p4, %p91_p3 }
   0xf   :  { %99 = shalt.err (!%p96_p5)
}
  0x10   :  { %s100_s28 = scalar_lea.vmem %s25_s20, 256  ;;  %p105_p7 = scmp.lt.s32.totalorder %s25_s20, %s25_s20 }
  0x11   :  { %p101_p6 = scmp.ne.s32.totalorder %s25_s20, %s100_s28  ;;  %p106_p8 = scmp.lt.s32.totalorder %s100_s28, %s100_s28 }
  0x13   :  { %p107_p9 = por %p106_p8, %p105_p7 }
  0x15   :  { %p108_p10 = pnand %p107_p9, %p101_p6 }
  0x17   :  { %111 = shalt.err (!%p108_p10)
}
  0x18   :  { %27 = dma.hbm_to_vmem [thread:$0]  %s195_s1, 256, %s25_s20, [#allocation3]  }
  0x19   :  { %134 = dma.done.wait [#allocation5], 16  }
  0x1a   :  { %135 = vsyncadd [#allocation5], 4294967280 }
  0x1b   :  { %136 = dma.done.wait [#allocation3], 256  }
  0x1c   :  { %137 = vsyncadd [#allocation3], 4294967040 }
  0x1d   :  { %34 = sfence }
  0x1e   :  { %s35_s30 = sld [smem:[#allocation2]]  ;;  %s73_s3 = sld [smem:[#allocation2 + $0x1]]  ;;  %v38_v0 = vld [vmem:[#allocation6] sm:$0xff]  ;;  %v39_v1 = vld [vmem:[#allocation6 + $0x8] sm:$0xff] }
  0x1f   :  { %s74_s4 = sld [smem:[#allocation2 + $0x2]]  ;;  %v40_v2 = vmax.f32 %v38_v0, 0.0  ;;  %v41_v3 = vmax.f32 %v39_v1, 0.0  ;;  %s142_s1 = smov [#allocation7]  }
  0x20   :  { %s63_s5 = sshll.u32 %s142_s1, 4  ;;  %s64_s5 = int_to_ptr.vmem [resolvable:$true] %s63_s5 }
  0x21   :  { %s112_s6 = scalar_lea.vmem %s64_s5, 256  ;;  %p117_p12 = scmp.lt.s32.totalorder %s64_s5, %s64_s5 }
  0x22   :  { %p113_p11 = scmp.ne.s32.totalorder %s64_s5, %s112_s6  ;;  %p118_p13 = scmp.lt.s32.totalorder %s112_s6, %s112_s6 }
  0x24   :  { %v42_v4 = vstv %s35_s30  ;;  %v47_v5 = vstv %s73_s3  ;;  %p119_p0 = por %p118_p13, %p117_p12 }
  0x25   :  { %vm43_vm0 = vcmp.lt.f32.partialorder %v40_v2, %v42_v4  ;;  %vm44_vm1 = vcmp.lt.f32.partialorder %v41_v3, %v42_v4  ;;  %v52_v10 = vstv %s74_s4 }
  0x26   :  { %v45_v6 = vsel %vm43_vm0, %v40_v2, %v42_v4  ;;  %v46_v7 = vsel %vm44_vm1, %v41_v3, %v42_v4  ;;  %p120_p1 = pnand %p119_p0, %p113_p11 }
  0x27   :  { %v48_v8 = vmul.f32 %v47_v5, %v45_v6  ;;  %v49_v9 = vmul.f32 %v47_v5, %v46_v7 }
  0x29   :  { %v75_v11 = vround.rtne.f32 %v48_v8  ;;  %v76_v12 = vround.rtne.f32 %v49_v9 }
  0x2b   :  { %v53_v13 = vmul.f32 %v75_v11, %v52_v10  ;;  %v54_v14 = vmul.f32 %v76_v12, %v52_v10 }
  0x2d   :  { %55 = vst [vmem:[#allocation7] sm:$0xff] %v53_v13  ;;  %56 = vst [vmem:[#allocation7 + $0x8] sm:$0xff] %v54_v14 }
  0x2e   :  { %123 = shalt.err (!%p120_p1)
}
  0x2f   :  { %s124_s9 = scalar_lea.hbm %s196_s2, 256 }
  0x30   :  { %p125_p2 = scmp.ne.s32.totalorder %s196_s2, %s124_s9  ;;  %p128_p3 = scmp.lt.u32.totalorder %s124_s9, %s196_s2 }
  0x32   :  { %p130_p4 = pnand %p128_p3, %p125_p2 }
  0x34   :  { %133 = shalt.err (!%p130_p4)
}
  0x35   :  { %66 = dma.vmem_to_hbm [thread:$0]  %s64_s5, 256, %s196_s2, [#allocation4]  }
  0x36   :  { %138 = dma.done.wait [#allocation4], 256  }
  0x37   :  { %139 = vsyncadd [#allocation4], 4294967040 }
  0x38   :  { %70 = vsyncpa [#allocation3], 1 }
  0x39   :  { %71 = vsyncpa [#allocation4], 1 }
  0x3a   :  { %72 = vsyncpa [#allocation5], 1 }

</bundles_post_ra>
